<compile_context>
chip_gen: v7x
topology: tpu7x:2x2x1
jax: 0.10.0
libtpu: 0.0.40
codegen_flags: <defaults>
</compile_context>

<pallas_src>
import jax
import jax.numpy as jnp
from jax import lax
from jax.experimental import pallas as pl
from jax.experimental.pallas import tpu as pltpu


def _round_up(x, m):
    return ((x + m - 1) // m) * m


# -----------------------------------------------------------------------------
# Pallas kernel: fused TPCA-featurize -> TPCA-denoise -> amplitude features.
# Operates on a lane-dense (T, tile_nc) column slab; each column is one
# (waveform, channel) pair, so all ops are independent per column.
# -----------------------------------------------------------------------------
def _pipeline_kernel(w_ref, comp_ref, pmean_ref, mean_ref,
                     den_ref, proj_ref, amp_ref):
    w = w_ref[...]                                      # (T, nc)  f32
    comp = comp_ref[...]                                # (R, T)   f32

    # TemporalPCAFeaturizer: comp @ (w - mean) == comp @ w - (comp @ mean)
    proj = jnp.dot(comp, w, preferred_element_type=jnp.float32)        # (R, nc)
    proj = proj - pmean_ref[...]                                       # (R,1) bcast
    proj_ref[...] = proj

    # TemporalPCADenoiser: comp.T @ proj + mean  (transposed-LHS dot_general,
    # contracting the R axis of comp -> no separate comp.T operand needed).
    recon = lax.dot_general(comp, proj, (((0,), (0,)), ((), ())),
                            preferred_element_type=jnp.float32)        # (T, nc)
    recon = recon + mean_ref[...]                                      # (T,1) bcast
    den_ref[...] = recon

    # AmplitudeFeatures on the denoised waveforms (per column).
    w_max = jnp.max(recon, axis=0, keepdims=True)                      # (1, nc)
    w_min = jnp.min(recon, axis=0, keepdims=True)                      # (1, nc)
    ptp = w_max - w_min
    peak = jnp.maximum(w_max, -w_min)          # == max |recon|, no extra abs pass
    amp_ref[...] = jnp.concatenate([ptp, peak], axis=0)                # (2, nc)


def waveform_pipeline_forward(waveforms, max_channels, components, mean,
                              *, max_tile_nc=8192):
    """Pallas-backed equivalent of WaveformPipeline.forward for the fixed pipeline.

    waveforms   : (N, T, C) float32
    max_channels: (N,) int32 (shape-checked only; these transformers ignore it)
    components  : (R, T) float32 temporal PCA basis (orthonormal rows)
    mean        : (T,)   float32 temporal mean
    Returns (denoised_waveforms, features_dict), like the torch module.
    """
    waveforms = jnp.asarray(waveforms)
    max_channels = jnp.asarray(max_channels)
    assert waveforms.ndim == 3
    assert max_channels.shape[0] == waveforms.shape[0]

    features = {}
    N, T, C = waveforms.shape
    if N == 0:
        return waveforms, features

    components = jnp.asarray(components, jnp.float32)
    mean = jnp.asarray(mean, jnp.float32)
    R = components.shape[0]

    # ---- tiling over the lane-dense column axis (N*C) -----------------------
    NC = N * C
    NC_128 = _round_up(NC, 128)

    T_pad = _round_up(T, 8)
    R_pad = _round_up(max(R, 1), 8)

    # f32 bytes per column held in VMEM per buffer: input + denoised + proj + amps.
    bytes_per_col = 4 * (2 * T_pad + R_pad + 8)
    vmem_block_budget = 24 * 1024 * 1024            # double-buffered block budget
    tile_cap = max(128, (vmem_block_budget // (2 * bytes_per_col)) // 128 * 128)
    max_tile = max(128, min(_round_up(max_tile_nc, 128), tile_cap))

    # >= 2 equal blocks whenever there is enough work, so the "parallel" grid
    # axis actually shards across both TensorCores on v7x.
    n_blocks = max(pl.cdiv(NC_128, max_tile), 2 if NC_128 >= 256 else 1)
    tile_nc = _round_up(pl.cdiv(NC_128, n_blocks), 128)
    n_blocks = pl.cdiv(NC_128, tile_nc)

    # ---- lane-dense slab (no explicit pad: ragged last block is masked) -----
    w2 = jnp.transpose(waveforms.astype(jnp.float32), (1, 0, 2)).reshape(T, NC)
    proj_mean = (components @ mean).reshape(R, 1)   # (R, 1) precomputed
    mean_col = mean.reshape(T, 1)                   # (T, 1)

    out_shapes = (
        jax.ShapeDtypeStruct((T, NC), jnp.float32),     # denoised slab
        jax.ShapeDtypeStruct((R, NC), jnp.float32),     # tpca projection slab
        jax.ShapeDtypeStruct((2, NC), jnp.float32),     # packed [ptp; peak] slab
    )

    grid_spec = pltpu.PrefetchScalarGridSpec(
        num_scalar_prefetch=0,
        grid=(n_blocks,),
        in_specs=[
            pl.BlockSpec((T, tile_nc), lambda i: (0, i)),
            pl.BlockSpec((R, T), lambda i: (0, 0)),
            pl.BlockSpec((R, 1), lambda i: (0, 0)),
            pl.BlockSpec((T, 1), lambda i: (0, 0)),
        ],
        out_specs=[
            pl.BlockSpec((T, tile_nc), lambda i: (0, i)),
            pl.BlockSpec((R, tile_nc), lambda i: (0, i)),
            pl.BlockSpec((2, tile_nc), lambda i: (0, i)),
        ],
    )

    # Right-sized VMEM limit: double-buffered blocks + constants + headroom,
    # capped so it stays comfortably inside v7x's 64 MiB physical VMEM.
    block_bytes = 2 * bytes_per_col * tile_nc
    const_bytes = 2 * 4 * (R_pad * _round_up(T, 128) + R_pad * 128 + T_pad * 128)
    vmem_limit = int(min(max(block_bytes + const_bytes + 16 * 1024 * 1024,
                             32 * 1024 * 1024),
                         48 * 1024 * 1024))

    den2, proj2, amp2 = pl.pallas_call(
        _pipeline_kernel,
        out_shape=out_shapes,
        grid_spec=grid_spec,
        compiler_params=pltpu.CompilerParams(
            dimension_semantics=("parallel",),
            vmem_limit_bytes=vmem_limit,
            allow_input_fusion=[True, False, False, False],
        ),
    )(w2, components, proj_mean, mean_col)

    # Restore (N, ...) layouts (reshapes are free; transposes are the remaining
    # wrapper cost, see TODO above).
    denoised = jnp.transpose(den2.reshape(T, N, C), (1, 0, 2))     # (N, T, C)
    projs = jnp.transpose(proj2.reshape(R, N, C), (1, 0, 2))       # (N, R, C)
    ptp_vec = amp2[0].reshape(N, C)                                # (N, C)
    peak_vec = amp2[1].reshape(N, C)                               # (N, C)

    features["input_tpca_projs"] = projs
    features["ptp_amplitude_vectors"] = ptp_vec
    features["peak_amplitude_vectors"] = peak_vec
    features["amplitudes"] = jnp.max(ptp_vec, axis=1)              # (N,)
    return denoised, features


# -----------------------------------------------------------------------------
# Pure-JAX reference (for correctness check)
# -----------------------------------------------------------------------------
def _reference_forward(waveforms, components, mean):
    hp = jax.lax.Precision.HIGHEST
    centered = waveforms - mean[None, :, None]
    projs = jnp.einsum("rt,ntc->nrc", components, centered, precision=hp)
    denoised = (jnp.einsum("rt,nrc->ntc", components, projs, precision=hp)
                + mean[None, :, None])
    ptp = denoised.max(1) - denoised.min(1)
    peak = jnp.abs(denoised).max(1)
    amps = ptp.max(1)
    return denoised, projs, ptp, peak, amps


if __name__ == "__main__":
    N, T, C, R = 48, 24, 8, 6   # small shapes; N*C=384 exercises 2 ragged blocks

    key = jax.random.PRNGKey(0)
    k_w, k_basis, k_mean, k_mc = jax.random.split(key, 4)

    waveforms = jax.random.normal(k_w, (N, T, C), dtype=jnp.float32)
    max_channels = jax.random.randint(k_mc, (N,), 0, C, dtype=jnp.int32)

    # deterministic parameter init: orthonormal temporal PCA basis + temporal mean
    q, _ = jnp.linalg.qr(jax.random.normal(k_basis, (T, T), dtype=jnp.float32))
    components = q[:, :R].T                               # (R, T), orthonormal rows
    mean = 0.1 * jax.random.normal(k_mean, (T,), dtype=jnp.float32)

    denoised, features = waveform_pipeline_forward(
        waveforms, max_channels, components, mean)
    jax.block_until_ready(denoised)
    jax.block_until_ready(features)

    ref_den, ref_proj, ref_ptp, ref_peak, ref_amp = _reference_forward(
        waveforms, components, mean)

    assert jnp.allclose(denoised, ref_den, atol=1e-3, rtol=1e-3)
    assert jnp.allclose(features["input_tpca_projs"], ref_proj, atol=1e-3, rtol=1e-3)
    assert jnp.allclose(features["ptp_amplitude_vectors"], ref_ptp, atol=1e-3, rtol=1e-3)
    assert jnp.allclose(features["peak_amplitude_vectors"], ref_peak, atol=1e-3, rtol=1e-3)
    assert jnp.allclose(features["amplitudes"], ref_amp, atol=1e-3, rtol=1e-3)

    print("KERNEL_OK")
</pallas_src>

<mosaic_0001>
module attributes {stable_mosaic.version = 11 : i64} {
  func.func @_pipeline_kernel(%arg0: i32, %arg1: memref<24x256xf32, #tpu.memory_space<vmem>>, %arg2: memref<6x24xf32, #tpu.memory_space<vmem>>, %arg3: memref<6x1xf32, #tpu.memory_space<vmem>>, %arg4: memref<24x1xf32, #tpu.memory_space<vmem>>, %arg5: memref<24x256xf32, #tpu.memory_space<vmem>>, %arg6: memref<6x256xf32, #tpu.memory_space<vmem>>, %arg7: memref<2x256xf32, #tpu.memory_space<vmem>>) attributes {dimension_semantics = [#tpu.dimension_semantics<parallel>], iteration_bounds = array<i64: 2>, scalar_prefetch = 0 : i64, scratch_operands = 0 : i64, tpu.core_type = #tpu.core_type<tc>, window_params = [{transform_indices = @transform_0, window_bounds = array<i64: 24, 256>}, {pipeline_mode = #tpu.pipeline_mode<synchronous>, transform_indices = @transform_1, window_bounds = array<i64: 6, 24>}, {pipeline_mode = #tpu.pipeline_mode<synchronous>, transform_indices = @transform_2, window_bounds = array<i64: 6, 1>}, {pipeline_mode = #tpu.pipeline_mode<synchronous>, transform_indices = @transform_3, window_bounds = array<i64: 24, 1>}, {transform_indices = @transform_4, window_bounds = array<i64: 24, 256>}, {transform_indices = @transform_5, window_bounds = array<i64: 6, 256>}, {transform_indices = @transform_6, window_bounds = array<i64: 2, 256>}]} {
    %c0 = arith.constant 0 : index
    %c0_0 = arith.constant 0 : index
    %0 = vector.load %arg1[%c0, %c0_0] : memref<24x256xf32, #tpu.memory_space<vmem>>, vector<24x256xf32>
    %c0_1 = arith.constant 0 : index
    %c0_2 = arith.constant 0 : index
    %1 = vector.load %arg2[%c0_1, %c0_2] : memref<6x24xf32, #tpu.memory_space<vmem>>, vector<6x24xf32>
    %cst = arith.constant dense<0.000000e+00> : vector<6x256xf32>
    %2 = tpu.matmul %1, %0, %cst {dimension_numbers = #tpu.dot_dimension_numbers<[1], [0], [0], [1], [0, 0, 1, 1], [], []>} : vector<6x24xf32>, vector<24x256xf32>, vector<6x256xf32> -> vector<6x256xf32>
    %c0_3 = arith.constant 0 : index
    %c0_4 = arith.constant 0 : index
    %3 = vector.load %arg3[%c0_3, %c0_4] : memref<6x1xf32, #tpu.memory_space<vmem>>, vector<6x1xf32>
    %4 = vector.broadcast %3 : vector<6x1xf32> to vector<6x256xf32>
    %5 = arith.subf %2, %4 : vector<6x256xf32>
    %c0_5 = arith.constant 0 : index
    %c0_6 = arith.constant 0 : index
    %6 = vector.load %arg6[%c0_5, %c0_6] : memref<6x256xf32, #tpu.memory_space<vmem>>, vector<6x256xf32>
    tpu.vector_store %arg6[%c0_5, %c0_6], %5 {strides = array<i32>} : memref<6x256xf32, #tpu.memory_space<vmem>>, vector<6x256xf32>,
    %cst_7 = arith.constant dense<0.000000e+00> : vector<24x256xf32>
    %7 = tpu.matmul %1, %5, %cst_7 {dimension_numbers = #tpu.dot_dimension_numbers<[0], [0], [1], [1], [0, 1, 1, 1], [], []>} : vector<6x24xf32>, vector<6x256xf32>, vector<24x256xf32> -> vector<24x256xf32>
    %c0_8 = arith.constant 0 : index
    %c0_9 = arith.constant 0 : index
    %8 = vector.load %arg4[%c0_8, %c0_9] : memref<24x1xf32, #tpu.memory_space<vmem>>, vector<24x1xf32>
    %9 = vector.broadcast %8 : vector<24x1xf32> to vector<24x256xf32>
    %10 = arith.addf %7, %9 : vector<24x256xf32>
    %c0_10 = arith.constant 0 : index
    %c0_11 = arith.constant 0 : index
    %11 = vector.load %arg5[%c0_10, %c0_11] : memref<24x256xf32, #tpu.memory_space<vmem>>, vector<24x256xf32>
    tpu.vector_store %arg5[%c0_10, %c0_11], %10 {strides = array<i32>} : memref<24x256xf32, #tpu.memory_space<vmem>>, vector<24x256xf32>,
    %cst_12 = arith.constant dense<0xFF800000> : vector<256xf32>
    %12 = vector.multi_reduction <maximumf>, %10, %cst_12 [0] : vector<24x256xf32> to vector<256xf32>
    %13 = vector.shape_cast %12 : vector<256xf32> to vector<1x256xf32>
    %cst_13 = arith.constant dense<0x7F800000> : vector<256xf32>
    %14 = vector.multi_reduction <minimumf>, %10, %cst_13 [0] : vector<24x256xf32> to vector<256xf32>
    %15 = vector.shape_cast %14 : vector<256xf32> to vector<1x256xf32>
    %16 = arith.subf %13, %15 : vector<1x256xf32>
    %cst_14 = arith.constant 0.000000e+00 : f32
    %17 = vector.broadcast %cst_14 : f32 to vector<1x256xf32>
    %18 = arith.subf %17, %15 : vector<1x256xf32>
    %19 = arith.maximumf %13, %18 : vector<1x256xf32>
    %20 = tpu.concatenate %16, %19 in 0 : vector<1x256xf32>, vector<1x256xf32> -> vector<2x256xf32>
    %c0_15 = arith.constant 0 : index
    %c0_16 = arith.constant 0 : index
    %21 = vector.load %arg7[%c0_15, %c0_16] : memref<2x256xf32, #tpu.memory_space<vmem>>, vector<2x256xf32>
    tpu.vector_store %arg7[%c0_15, %c0_16], %20 {strides = array<i32>} : memref<2x256xf32, #tpu.memory_space<vmem>>, vector<2x256xf32>,
    return
  }
  func.func @transform_0(%arg0: i32) -> (i32, i32) {
    %c0_i32 = arith.constant 0 : i32
    %c0_i32_0 = arith.constant 0 : i32
    return %c0_i32, %arg0 : i32, i32
  }
  func.func @transform_1(%arg0: i32) -> (i32, i32) {
    %c0_i32 = arith.constant 0 : i32
    %c0_i32_0 = arith.constant 0 : i32
    %c0_i32_1 = arith.constant 0 : i32
    return %c0_i32, %c0_i32_0 : i32, i32
  }
  func.func @transform_2(%arg0: i32) -> (i32, i32) {
    %c0_i32 = arith.constant 0 : i32
    %c0_i32_0 = arith.constant 0 : i32
    %c0_i32_1 = arith.constant 0 : i32
    return %c0_i32, %c0_i32_0 : i32, i32
  }
  func.func @transform_3(%arg0: i32) -> (i32, i32) {
    %c0_i32 = arith.constant 0 : i32
    %c0_i32_0 = arith.constant 0 : i32
    %c0_i32_1 = arith.constant 0 : i32
    return %c0_i32, %c0_i32_0 : i32, i32
  }
  func.func @transform_4(%arg0: i32) -> (i32, i32) {
    %c0_i32 = arith.constant 0 : i32
    %c0_i32_0 = arith.constant 0 : i32
    return %c0_i32, %arg0 : i32, i32
  }
  func.func @transform_5(%arg0: i32) -> (i32, i32) {
    %c0_i32 = arith.constant 0 : i32
    %c0_i32_0 = arith.constant 0 : i32
    return %c0_i32, %arg0 : i32, i32
  }
  func.func @transform_6(%arg0: i32) -> (i32, i32) {
    %c0_i32 = arith.constant 0 : i32
    %c0_i32_0 = arith.constant 0 : i32
    return %c0_i32, %arg0 : i32, i32
  }
}

</mosaic_0001>

<bundles_post_ra>
// kernel: tpu_custom_call.1
= control target key start
LH: loop header
LB: loop body
LE: loop exit
PB: predicated region body
PF: predicated region fallthrough
CT: control target
= control target key end

     0   :  { %s1428_s0 = inlined_call_operand.hbm [shape: f32[24,384], index: 0, kind: input, shape index: {}]   ;;  %s1429_s1 = inlined_call_operand.vmem [shape: f32[6,24], index: 1, kind: input, shape index: {}]   ;;  %s1430_s2 = inlined_call_operand.vmem [shape: f32[6,1], index: 2, kind: input, shape index: {}]   ;;  %s1431_s3 = inlined_call_operand.vmem [shape: f32[24,1], index: 3, kind: input, shape index: {}]   ;;  %s1432_s4 = inlined_call_operand.hbm [shape: f32[24,384], index: 4, kind: output, shape index: {0}]   ;;  %s1433_s5 = inlined_call_operand.hbm [shape: f32[6,384], index: 5, kind: output, shape index: {1}]   ;;  %s1434_s6 = inlined_call_operand.hbm [shape: f32[2,384], index: 6, kind: output, shape index: {2}]  }
   0x1   :  { %1438 = sst [smem:[#allocation12_spill]] %s1428_s0 }
   0x2   :  { %1439 = sst [smem:[#allocation13_spill]] %s1429_s1 }
   0x3   :  { %12 = vsyncpa [#allocation3], 0 }
   0x4   :  { %14 = vsyncpa [#allocation3 + $0x1], 0 }
   0x5   :  { %15 = vsyncpa [#allocation4], 0 }
   0x6   :  { %17 = vsyncpa [#allocation4 + $0x1], 0 }
   0x7   :  { %18 = vsyncpa [#allocation7], 0 }
   0x8   :  { %20 = vsyncpa [#allocation7 + $0x1], 0  ;;  %s1128_s21 = smov 0   ;;  %s1130_s22 = smov 0  }
   0x9   :  { %s1132_s23 = smov 0   ;;  %s1134_s24 = smov 0  }
   0xa LB: > { %s1149_s25 = sadd.s32 4294967295, %s1081_s24   ;;  %s1435_s26 = sadd.s32 4294967294, %s1081_s24   ;;  %s1081_s24 = sphi %s1134_s24, %s1452_s24   ;;  %s1077_s23 = sphi %s1132_s23, %s1451_s23   ;;  %s1073_s22 = sphi %s1130_s22, %s1450_s22   ;;  %s1069_s21 = sphi %s1128_s21, %s1449_s21  }
   0xb   : > { %s1153_s27 = sadd.s32 1, %s1081_s24   ;;  %s33_s28 = sadd.s32 1, %s1077_s23 }
   0xc   : > { %s30_s29 = ssub.s32 %s1081_s24, %s1153_s27  ;;  %p40_p0 = scmp.ne.s32.totalorder %s1077_s23, %s1073_s22 }
   0xd   : > { %p31_p1 = scmp.eq.s32.totalorder %s30_s29, 0  ;;  %p41_p2 = scmp.eq.s32.totalorder %s1081_s24, 0 }
   0xe   : > { %p46_p3 = scmp.ne.s32.totalorder %s1073_s22, %s1069_s21  ;;  %p47_p4 = scmp.eq.s32.totalorder %s1149_s25, 0 }
   0xf   : > { %s1165_s30 = scalar_select %p31_p1, %s1077_s23, %s33_s28  }
  0x10   : > { %p42_p5 = por %p41_p2, %p40_p0  ;;  %p1167_p6 = por %p47_p4, %p46_p3 }
  0x11   : > { %p133_p7 = scmp.eq.s32.totalorder %s1149_s25, 1  ;;  %p139_p8 = scmp.eq.s32.totalorder %s1435_s26, 1 }
  0x12   : > { %p1436_p11 = scmp.ge.s32.totalorder %s1081_s24, 2 }
  0x13   : > { %p1174_p9 = por %p133_p7, %p40_p0  ;;  %p1178_p10 = por %p139_p8, %p46_p3 }
  0x14   : > { %216 = sbr.rel (%p1436_p11) target bundleno = 68 (0x44), region = 28 }
  0x15   : > { %s1442_s9 = scalar_select %p1178_p10, 1, 0 }
  0x1b   : > { %219 = sbr.rel (!%p42_p5) target bundleno = 68 (0x44), region = 32  ;;  %s220_s10 = sand.u32 (%p42_p5), 1, %s1077_s23  }
  0x1c   : > { %s824_s11 = sshll.u32 (%p42_p5), %s1081_s24, 1  ;;  %s870_s12 = smul.u32 (%p42_p5), 48, %s220_s10 }
  0x1d   : > { %s226_s13 = ssub.s32 (%p42_p5), 3, %s824_s11  ;;  %s1193_s16 = scalar_lea.sflag (%p42_p5), [#allocation3], %s220_s10 }
  0x1e   : > { %p227_p12 = scmp.lt.s32.totalorder (%p42_p5), %s226_s13, 2  ;;  %s224_s17 = scalar_lea.vmem (%p42_p5), [#allocation2], %s870_s12 }
  0x22   : > { %s1454_s13 = smov (!%p227_p12, %s226_s13), 2 }
  0x23   : > { %s1190_s14 = smul.u32 384, %s1454_s13 }
  0x25   : > { %s231_s15 = ssub.s32 768, %s1190_s14 }
  0x26   : > { %232 = vsyncadd %s1193_s16, %s231_s15  ;;  %p825_p13 = scmp.ne.s32.totalorder %s1190_s14, 0  ;;  %s862_s18 = sshll.u32 %s1081_s24, 8 }
  0x27   : > { %s1443_s0 = sld [smem:[#allocation12_spill]]  ;;  %s827_s29 = sshll.u32 %s1454_s13, 3 }
  0x28   : > { %s238_s10 = sshll.u32 %s224_s17, 4  ;;  %s1204_s10 = int_to_ptr.vmem [resolvable:$true] %s238_s10 }
  0x2d   : > { %s1201_s28 = scalar_lea.hbm %s1443_s0, %s862_s18  ;;  %s931_s26 = scalar_lea.hbm %s1443_s0, 1152 }
  0x2e   : > { %s927_s11 = scalar_lea.hbm %s1201_s28, %s1190_s14  ;;  %p932_p3 = scmp.lt.u32.totalorder %s1201_s28, %s1443_s0 }
  0x2f   : > { %p928_p0 = scmp.ne.s32.totalorder %s1201_s28, %s927_s11  ;;  %p933_p4 = scmp.lt.u32.totalorder %s931_s26, %s927_s11 }
  0x30   : > { %p935_p7 = scmp.lt.u32.totalorder %s927_s11, %s1201_s28 }
  0x31   : > { %p929_p1 = pnand %p928_p0, %p825_p13  ;;  %p934_p5 = por %p933_p4, %p932_p3 }
  0x33   : > { %p930_p2 = pneg %p929_p1  ;;  %p936_p8 = por %p935_p7, %p934_p5 }
  0x35   : > { %p937_p12 = pnand %p936_p8, %p930_p2 }
  0x37   : > { %940 = shalt.err (!%p937_p12)
}
  0x38   : > { %s941_s17 = scalar_lea.vmem %s1204_s10, %s1190_s14  ;;  %s1083_s20 = smov [#allocation2]  }
  0x39   : > { %p942_p0 = scmp.ne.s32.totalorder %s1204_s10, %s941_s17  ;;  %s945_s12 = sshll.u32 %s1083_s20, 4  ;;  %s946_s12 = int_to_ptr.vmem [resolvable:$false] %s945_s12 }
  0x3a   : > { %s947_s15 = scalar_lea.vmem %s946_s12, 1536  ;;  %p948_p10 = scmp.lt.s32.totalorder %s1204_s10, %s946_s12 }
  0x3b   : > { %p943_p1 = pnand %p942_p0, %p825_p13  ;;  %p949_p3 = scmp.lt.s32.totalorder %s947_s15, %s941_s17 }
  0x3d   : > { %p944_p11 = pneg %p943_p1  ;;  %p950_p4 = por %p949_p3, %p948_p10 }
  0x3f   : > { %p951_p5 = pnand %p950_p4, %p944_p11 }
  0x41   : > { %954 = shalt.err (!%p951_p5)
}
  0x42   : > { %s1084_s26 = smov 384   ;;  %s1085_s11 = smov 256  }
  0x43   : > { %244 = dma.hbm_to_vmem [thread:$0]  (%p825_p13), %s1201_s28, %s1190_s14, %s1204_s10, %s1193_s16, %s1084_s26, %s1085_s11, %s827_s29  }
  0x44 PF: > { %p830_p2 = scmp.ge.s32.totalorder %s1081_s24, 1  ;;  %p246_p7 = scmp.lt.s32.totalorder %s1081_s24, 3 }
  0x46   : > { %p247_p10 = pnand %p830_p2, %p246_p7 }
  0x47   : > { %s1236_s19 = sand.u32 (!%p247_p10), 1, %s1073_s22  }
  0x48   : > { %250 = sbr.rel (%p247_p10) target bundleno = 652 (0x28c), region = 36  ;;  %s253_s17 = scalar_lea.sflag (!%p247_p10), [#allocation3], %s1236_s19 }
  0x49   : > { %s871_s18 = smul.u32 (!%p247_p10), 48, %s1236_s19 }
  0x4b   : > { %s256_s13 = scalar_lea.vmem (!%p247_p10), [#allocation2], %s871_s18 }
  0x4f   : > { %1056 = dma.done.wait (%p1167_p6), %s253_s17, 768  }
  0x50   : > { %1058 = vsyncadd (%p1167_p6), %s253_s17, 4294966528  ;;  %v1086_v0 = vmov 0.0   ;;  %v1087_v1 = vmov 0   ;;  %v316_v2 = vld [vmem:[%s256_s13 + $0x8] sm:$0xff]  ;;  %v318_v3 = vld [vmem:[%s256_s13 + $0x18] sm:$0xff]  ;;  %s1444_s1 = sld [smem:[#allocation13_spill]] }
  0x51   : > { %390 = vmatprep.mubr.f32.mxu0 %v1086_v0  ;;  %925 = vset.pattern.permute.xlu0 %v1087_v1  ;;  %v315_v4 = vld [vmem:[%s256_s13] sm:$0xff]  ;;  %v866_v5 = vpack.c.bf16 %v318_v3, %v316_v2  ;;  %v317_v6 = vld [vmem:[%s256_s13 + $0x10] sm:$0xff]  ;;  %v320_v8 = vld [vmem:[%s256_s13 + $0x28] sm:$0xff]  ;;  %vm322_vm0 = vcmask 195584   ;;  %s831_s11 = sshll.u32 %s1236_s19, 4  ;;  %vm467_vm1 = vcmask 1045504  }
  0x52   : > { %538 = vmatprep.mubr.f32.mxu1 %v1086_v0  ;;  %926 = vset.pattern.permute.xlu1 %v1087_v1  ;;  %v868_v7 = vpack.c.bf16 %v317_v6, %v315_v4  ;;  %v397_v9 = vld [vmem:[%s1430_s2] sm:$0x3f]  ;;  %v409_v13 = vld [vmem:[%s1431_s3 + $0x10] sm:$0xff]  ;;  %v408_v14 = vld [vmem:[%s1431_s3 + $0x8] sm:$0xff]  ;;  %s1262_s17 = scalar_lea.vmem [#allocation6], %s831_s11  ;;  %vm457_vm2 = vcmask 48128  }
  0x53   : > { %867 = vmatprep.subr.bf16.mxu0 %v866_v5  ;;  %400 = vperm.xlu0 %925, %v397_v9   ;;  %v319_v10 = vld [vmem:[%s256_s13 + $0x20] sm:$0xff]  ;;  %s621_s13 = sand.u32 1, %s1149_s25   ;;  %s1269_s14 = scalar_lea.vmem [#allocation5], %s871_s18  ;;  %vm601_vm3 = vcmask 1040384  }
  0x54   : > { %869 = vmatpush1.bf16.msra.mxu0 %v868_v7  ;;  %v407_v12 = vld [vmem:[%s1431_s3] sm:$0xff]  ;;  %s832_s18 = sshll.u32 %s1236_s19, 2  ;;  %s1437_s7 = scalar_lea.sflag [#allocation4], %s1236_s19 }
  0x55   : > { %330 = vmatprep.subr.mxu0 %v320_v8  ;;  %412 = vperm.xlu1 %926, %v407_v12   ;;  %s1278_s16 = scalar_lea.vmem [#allocation8], %s832_s18  ;;  %s1284_s28 = scalar_lea.sflag [#allocation7], %s621_s13 }
  0x56   : > { %v321_v11 = vld [vmem:[%s1444_s1] sm:$0x3f]  ;;  %s842_s29 = sshll.u32 (%p1174_p9), %s1149_s25, 1 }
  0x57   : > { %s635_s10 = ssub.s32 (%p1174_p9), 3, %s842_s29 }
  0x58   : > { %331 = vmatpush1.msra.mxu0 %v319_v10  ;;  %p636_p6 = scmp.lt.s32.totalorder (%p1174_p9), %s635_s10, 2 }
  0x59   : > { %833 = vmatmul.mubr.msk.f32.vlgmr.msra.gmra.mrb[0].mxu0 %vm322_vm0, %v321_v11  ;;  %422 = vperm.xlu1 %926, %v409_v13  }
  0x5d   : > { %417 = vperm.xlu1 %926, %v408_v14  }
  0x71   : > { %425 = vxpose.xlu0.b32.start.end [1/1] (short) (narrow) %v321_v11, 24 }
  0xd2   : > { %v401_v15 = vpop.permute.xlu0 %400 }
  0xd4   : > { %v413_v23 = vpop.permute.xlu1 %412 }
  0xd8   : > { %v423_v24 = vpop.permute.xlu1 %422 }
  0xdc   : > { %v418_v29 = vpop.permute.xlu1 %417 }
  0xf1   : > { %v441_v16 = vpop.trf.xlu0 }
  0xf5   : > { %v442_v21 = vpop.trf.xlu0 }
  0xf9   : > { %v443_v22 = vpop.trf.xlu0 }
 0x12c   : > { %v392_v17 = vpop.f32.mrb[0].mxu0 }
 0x12d   : > { %v403_v18 = vsub.f32 %v392_v17, %v401_v15  ;;  %v394_v19 = vpop.f32.mrb[1].mxu0 }
 0x12e   : > { %v404_v20 = vsub.f32 %v394_v19, %v401_v15 }
 0x12f   : > { %405 = vst [vmem:[%s1262_s17] sm:$0x3f] %v403_v18 }
 0x130   : > { %406 = vst [vmem:[%s1262_s17 + $0x8] sm:$0x3f] %v404_v20  ;;  %834 = vmatprep.subr.msk.mxu1 %vm467_vm1, %v404_v20 }
 0x131   : > { %835 = vmatpush1.msk.msra.mxu1 %vm467_vm1, %v403_v18 }
 0x132   : > { %836 = vmatmul.mubr.msk.f32.vlgmr.msra.gmra.mrb[0].mxu1 %vm457_vm2, %v441_v16 }
 0x133   : > { %544 = vmatprep.mubr.f32.mxu1 %v1086_v0 }
 0x136   : > { %837 = vmatmul.mubr.msk.f32.gmra.mrb[2].mxu1 %vm457_vm2, %v442_v21 }
 0x137   : > { %550 = vmatprep.mubr.f32.mxu1 %v1086_v0 }
 0x13a   : > { %838 = vmatmul.mubr.msk.f32.gmra.mrb[4].mxu1 %vm457_vm2, %v443_v22 }
 0x205   : > { %v540_v25 = vpop.f32.mrb[0].mxu1 }
 0x206   : > { %v541_v26 = vadd.f32 %v540_v25, %v413_v23  ;;  %v542_v27 = vpop.f32.mrb[1].mxu1 }
 0x207   : > { %v543_v28 = vadd.f32 %v542_v27, %v413_v23 }
 0x208   : > { %557 = vst [vmem:[%s1269_s14] sm:$0xff] %v541_v26 }
 0x209   : > { %558 = vst [vmem:[%s1269_s14 + $0x8] sm:$0xff] %v543_v28  ;;  %v546_v30 = vpop.f32.mrb[2].mxu1 }
 0x20a   : > { %v547_v31 = vadd.f32 %v546_v30, %v418_v29  ;;  %v548_v32 = vpop.f32.mrb[3].mxu1 }
 0x20b   : > { %v549_v33 = vadd.f32 %v548_v32, %v418_v29 }
 0x20c   : > { %559 = vst [vmem:[%s1269_s14 + $0x10] sm:$0xff] %v547_v31 }
 0x20d   : > { %560 = vst [vmem:[%s1269_s14 + $0x18] sm:$0xff] %v549_v33  ;;  %v552_v34 = vpop.f32.mrb[4].mxu1 }
 0x20e   : > { %v553_v35 = vadd.f32 %v552_v34, %v423_v24  ;;  %v554_v36 = vpop.f32.mrb[5].mxu1 }
 0x20f   : > { %v555_v37 = vadd.f32 %v554_v36, %v423_v24 }
 0x210   : > { %561 = vst [vmem:[%s1269_s14 + $0x20] sm:$0xff] %v553_v35  ;;  %v563_v38 = vmax.f32 %v541_v26, %v553_v35  ;;  %v579_v39 = vmin.f32 %v541_v26, %v553_v35 }
 0x211   : > { %562 = vst [vmem:[%s1269_s14 + $0x28] sm:$0xff] %v555_v37  ;;  %v571_v40 = vmax.f32 %v543_v28, %v555_v37  ;;  %v587_v41 = vmin.f32 %v543_v28, %v555_v37 }
 0x212   : > { %v564_v42 = vmax.f32 %v563_v38, %v547_v31  ;;  %v580_v43 = vmin.f32 %v579_v39, %v547_v31 }
 0x213   : > { %v572_v44 = vmax.f32 %v571_v40, %v549_v33  ;;  %v588_v45 = vmin.f32 %v587_v41, %v549_v33 }
 0x214   : > { %v565_v46 = vrot.slane %v564_v42, 4  ;;  %v581_v47 = vrot.slane %v580_v43, 4 }
 0x215   : > { %v573_v48 = vrot.slane %v572_v44, 4  ;;  %v589_v49 = vrot.slane %v588_v45, 4 }
 0x216   : > { %v566_v50 = vmax.f32 %v564_v42, %v565_v46  ;;  %v582_v51 = vmin.f32 %v580_v43, %v581_v47 }
 0x217   : > { %v574_v52 = vmax.f32 %v572_v44, %v573_v48  ;;  %v590_v53 = vmin.f32 %v588_v45, %v589_v49 }
 0x218   : > { %v567_v54 = vrot.slane %v566_v50, 2  ;;  %v583_v55 = vrot.slane %v582_v51, 2 }
 0x219   : > { %v575_v56 = vrot.slane %v574_v52, 2  ;;  %v591_v57 = vrot.slane %v590_v53, 2 }
 0x21a   : > { %v568_v58 = vmax.f32 %v566_v50, %v567_v54  ;;  %v584_v59 = vmin.f32 %v582_v51, %v583_v55 }
 0x21b   : > { %v576_v60 = vmax.f32 %v574_v52, %v575_v56  ;;  %v592_v61 = vmin.f32 %v590_v53, %v591_v57 }
 0x21c   : > { %v569_v62 = vrot.slane %v568_v58, 1  ;;  %v585_v63 = vrot.slane %v584_v59, 1 }
 0x21d   : > { %v577_v0 = vrot.slane %v576_v60, 1  ;;  %v593_v1 = vrot.slane %v592_v61, 1 }
 0x21e   : > { %v570_v2 = vmax.f32 %v568_v58, %v569_v62  ;;  %v586_v3 = vmin.f32 %v584_v59, %v585_v63 }
 0x21f   : > { %v578_v4 = vmax.f32 %v576_v60, %v577_v0  ;;  %v594_v5 = vmin.f32 %v592_v61, %v593_v1 }
 0x220   : > { %v595_v6 = vsub.f32 %v570_v2, %v586_v3  ;;  %v597_v7 = vsub.f32 0.0, %v586_v3 }
 0x221   : > { %v596_v8 = vsub.f32 %v578_v4, %v594_v5  ;;  %v598_v9 = vsub.f32 0.0, %v594_v5 }
 0x222   : > { %v599_v10 = vmax.f32 %v570_v2, %v597_v7  ;;  %633 = sbr.rel (!%p1174_p9) target bundleno = 584 (0x248), region = 44 }
 0x223   : > { %v600_v11 = vmax.f32 %v578_v4, %v598_v9 }
 0x224   : > { %v602_v12 = vsel %vm601_vm3, %v595_v6, %v599_v10 }
 0x225   : > { %v603_v13 = vsel %vm601_vm3, %v596_v8, %v600_v11 }
 0x226   : > { %v606_v14 = vcombine.low %v602_v12, %v603_v13 }
 0x228   : > { %839 = vst.sshfl [vmem:[%s1278_s16] sm:$0x33 pattern:$0x76325410] %v606_v14 }
 0x229   : > { %s1456_s10 = smov (!%p636_p6, %s635_s10), 2 }
 0x22a   : > { %s1292_s20 = smul.u32 384, %s1456_s10 }
 0x22c   : > { %s640_s12 = ssub.s32 768, %s1292_s20 }
 0x22d   : > { %641 = vsyncadd %s1437_s7, %s640_s12  ;;  %p843_p11 = scmp.ne.s32.totalorder %s1292_s20, 0  ;;  %s863_s15 = sshll.u32 %s1149_s25, 8 }
 0x22e   : > { %s1302_s13 = scalar_lea.hbm %s1432_s4, %s863_s15  ;;  %s845_s18 = sshll.u32 %s1456_s10, 3 }
 0x22f   : > { %s647_s29 = sshll.u32 %s1269_s14, 4  ;;  %s1088_s7 = smov [#allocation5]   ;;  %s1306_s29 = int_to_ptr.vmem [resolvable:$true] %s647_s29 }
 0x230   : > { %s955_s12 = scalar_lea.vmem %s1306_s29, %s1292_s20  ;;  %s959_s0 = sshll.u32 %s1088_s7, 4  ;;  %s960_s0 = int_to_ptr.vmem [resolvable:$false] %s959_s0 }
 0x231   : > { %p956_p13 = scmp.ne.s32.totalorder %s1306_s29, %s955_s12  ;;  %s961_s1 = scalar_lea.vmem %s960_s0, 1536 }
 0x232   : > { %p962_p0 = scmp.lt.s32.totalorder %s1306_s29, %s960_s0  ;;  %p963_p1 = scmp.lt.s32.totalorder %s961_s1, %s955_s12 }
 0x233   : > { %p957_p8 = pnand %p956_p13, %p843_p11 }
 0x234   : > { %p964_p3 = por %p963_p1, %p962_p0 }
 0x235   : > { %p958_p12 = pneg %p957_p8 }
 0x237   : > { %p965_p4 = pnand %p964_p3, %p958_p12 }
 0x239   : > { %968 = shalt.err (!%p965_p4)
}
 0x23a   : > { %s969_s14 = scalar_lea.hbm %s1302_s13, %s1292_s20  ;;  %s973_s26 = scalar_lea.hbm %s1432_s4, 1152 }
 0x23b   : > { %p970_p5 = scmp.ne.s32.totalorder %s1302_s13, %s969_s14  ;;  %p974_p10 = scmp.lt.u32.totalorder %s1302_s13, %s1432_s4 }
 0x23c   : > { %p975_p6 = scmp.lt.u32.totalorder %s973_s26, %s969_s14  ;;  %p977_p8 = scmp.lt.u32.totalorder %s969_s14, %s1302_s13 }
 0x23d   : > { %p971_p2 = pnand %p970_p5, %p843_p11 }
 0x23e   : > { %p976_p13 = por %p975_p6, %p974_p10 }
 0x23f   : > { %p972_p7 = pneg %p971_p2 }
 0x240   : > { %p978_p12 = por %p977_p8, %p976_p13 }
 0x242   : > { %p979_p0 = pnand %p978_p12, %p972_p7 }
 0x244   : > { %982 = shalt.err (!%p979_p0)
}
 0x245   : > { %s1089_s11 = smov 256   ;;  %s1090_s12 = smov 384  }
 0x246   : > { %s1445_s15 = scalar_lea.sflag [#allocation4], %s1236_s19 }
 0x247   : > { %653 = dma.vmem_to_hbm [thread:$0]  (%p843_p11), %s1306_s29, %s1292_s20, %s1302_s13, %s1445_s15, %s1089_s11, %s1090_s12, %s845_s18  }
 0x248 PF: > { %656 = sbr.rel (!%p1174_p9) target bundleno = 618 (0x26a), region = 48  ;;  %s848_s14 = sshll.u32 (%p1174_p9), %s1149_s25, 1 }
 0x249   : > { %s658_s7 = ssub.s32 (%p1174_p9), 3, %s848_s14 }
 0x24a   : > { %p659_p1 = scmp.lt.s32.totalorder (%p1174_p9), %s658_s7, 2 }
 0x24f   : > { %s1458_s7 = smov (!%p659_p1, %s658_s7), 2 }
 0x250   : > { %s1339_s26 = sshll.u32 %s1458_s7, 7 }
 0x251   : > { %s663_s0 = ssub.s32 256, %s1339_s26 }
 0x252   : > { %664 = vsyncadd %s1284_s28, %s663_s0  ;;  %p850_p11 = scmp.ne.s32.totalorder %s1339_s26, 0  ;;  %s864_s19 = sshll.u32 %s1149_s25, 8 }
 0x253   : > { %s1348_s13 = scalar_lea.hbm %s1433_s5, %s864_s19  ;;  %s670_s18 = sshll.u32 %s1262_s17, 4  ;;  %s671_s18 = int_to_ptr.vmem [resolvable:$true] %s670_s18 }
 0x254   : > { %s983_s29 = scalar_lea.vmem %s671_s18, %s1339_s26  ;;  %s1091_s1 = smov [#allocation6]  }
 0x255   : > { %p984_p3 = scmp.ne.s32.totalorder %s671_s18, %s983_s29  ;;  %s987_s11 = sshll.u32 %s1091_s1, 4  ;;  %s988_s11 = int_to_ptr.vmem [resolvable:$false] %s987_s11 }
 0x256   : > { %s989_s12 = scalar_lea.vmem %s988_s11, 512  ;;  %p990_p2 = scmp.lt.s32.totalorder %s671_s18, %s988_s11 }
 0x257   : > { %p985_p4 = pnand %p984_p3, %p850_p11  ;;  %p991_p7 = scmp.lt.s32.totalorder %s989_s12, %s983_s29 }
 0x259   : > { %p986_p5 = pneg %p985_p4  ;;  %p992_p10 = por %p991_p7, %p990_p2 }
 0x25b   : > { %p993_p6 = pnand %p992_p10, %p986_p5 }
 0x25d   : > { %996 = shalt.err (!%p993_p6)
}
 0x25e   : > { %s997_s17 = scalar_lea.hbm %s1348_s13, %s1339_s26  ;;  %s1001_s7 = scalar_lea.hbm %s1433_s5, 384 }
 0x25f   : > { %p998_p13 = scmp.ne.s32.totalorder %s1348_s13, %s997_s17  ;;  %p1002_p0 = scmp.lt.u32.totalorder %s1348_s13, %s1433_s5 }
 0x260   : > { %p1003_p1 = scmp.lt.u32.totalorder %s1001_s7, %s997_s17  ;;  %p1005_p4 = scmp.lt.u32.totalorder %s997_s17, %s1348_s13 }
 0x261   : > { %p999_p8 = pnand %p998_p13, %p850_p11 }
 0x262   : > { %p1004_p3 = por %p1003_p1, %p1002_p0 }
 0x263   : > { %p1000_p12 = pneg %p999_p8 }
 0x264   : > { %p1006_p5 = por %p1005_p4, %p1004_p3 }
 0x266   : > { %p1007_p2 = pnand %p1006_p5, %p1000_p12 }
 0x268   : > { %1010 = shalt.err (!%p1007_p2)
}
 0x269   : > { %673 = dma.vmem_to_hbm [thread:$0]  (%p850_p11), %s671_s18, %s1339_s26, %s1348_s13, %s1284_s28  }
 0x26a PF: > { %676 = sbr.rel (!%p1174_p9) target bundleno = 652 (0x28c), region = 52  ;;  %s854_s10 = sshll.u32 (%p1174_p9), %s1149_s25, 1 }
 0x26b   : > { %s678_s20 = ssub.s32 (%p1174_p9), 3, %s854_s10 }
 0x26c   : > { %p679_p7 = scmp.lt.s32.totalorder (%p1174_p9), %s678_s20, 2 }
 0x271   : > { %s1460_s20 = smov (!%p679_p7, %s678_s20), 2 }
 0x272   : > { %s1375_s29 = sshll.u32 %s1460_s20, 5 }
 0x273   : > { %s683_s1 = ssub.s32 64, %s1375_s29 }
 0x274   : > { %684 = vsyncadd %s1284_s28, %s683_s1  ;;  %p856_p11 = scmp.ne.s32.totalorder %s1375_s29, 0  ;;  %s865_s26 = sshll.u32 %s1149_s25, 6 }
 0x275   : > { %s1384_s18 = scalar_lea.hbm %s1434_s6, %s865_s26  ;;  %s690_s11 = sshll.u32 %s1278_s16, 4  ;;  %s691_s11 = int_to_ptr.vmem [resolvable:$true] %s690_s11 }
 0x276   : > { %s1011_s12 = scalar_lea.vmem %s691_s11, %s1375_s29  ;;  %s1092_s17 = smov [#allocation8]  }
 0x277   : > { %p1012_p9 = scmp.ne.s32.totalorder %s691_s11, %s1011_s12  ;;  %s1015_s15 = sshll.u32 %s1092_s17, 4  ;;  %s1016_s15 = int_to_ptr.vmem [resolvable:$false] %s1015_s15 }
 0x278   : > { %s1017_s14 = scalar_lea.vmem %s1016_s15, 128  ;;  %p1018_p13 = scmp.lt.s32.totalorder %s691_s11, %s1016_s15 }
 0x279   : > { %p1013_p10 = pnand %p1012_p9, %p856_p11  ;;  %p1019_p8 = scmp.lt.s32.totalorder %s1017_s14, %s1011_s12 }
 0x27b   : > { %p1014_p6 = pneg %p1013_p10  ;;  %p1020_p12 = por %p1019_p8, %p1018_p13 }
 0x27d   : > { %p1021_p0 = pnand %p1020_p12, %p1014_p6 }
 0x27f   : > { %1024 = shalt.err (!%p1021_p0)
}
 0x280   : > { %s1025_s25 = scalar_lea.hbm %s1384_s18, %s1375_s29  ;;  %s1029_s0 = scalar_lea.hbm %s1434_s6, 96 }
 0x281   : > { %p1026_p1 = scmp.ne.s32.totalorder %s1384_s18, %s1025_s25  ;;  %p1030_p5 = scmp.lt.u32.totalorder %s1384_s18, %s1434_s6 }
 0x282   : > { %p1031_p2 = scmp.lt.u32.totalorder %s1029_s0, %s1025_s25  ;;  %p1033_p9 = scmp.lt.u32.totalorder %s1025_s25, %s1384_s18 }
 0x283   : > { %p1027_p3 = pnand %p1026_p1, %p856_p11 }
 0x284   : > { %p1032_p7 = por %p1031_p2, %p1030_p5 }
 0x285   : > { %p1028_p4 = pneg %p1027_p3 }
 0x286   : > { %p1034_p10 = por %p1033_p9, %p1032_p7 }
 0x288   : > { %p1035_p6 = pnand %p1034_p10, %p1028_p4 }
 0x28a   : > { %1038 = shalt.err (!%p1035_p6)
}
 0x28b   : > { %693 = dma.vmem_to_hbm [thread:$0]  (%p856_p11), %s691_s11, %s1375_s29, %s1384_s18, %s1284_s28  }
 0x28c PF: > { %s702_s20 = sand.u32 1, %s1069_s21   ;;  %p1446_p13 = scmp.ne.s32.totalorder %s1442_s9, 0 }
 0x28d   : > { %p1447_p8 = scmp.ge.s32.totalorder %s1081_s24, 2  ;;  %s703_s1 = scalar_lea.sflag [#allocation4], %s702_s20 }
 0x28f   : > { %p877_p12 = pnand %p1447_p8, %p1446_p13 }
 0x291   : > { %1060 = dma.done.wait (!%p877_p12), %s703_s1, 768  }
 0x292   : > { %1062 = vsyncadd (!%p877_p12), %s703_s1, 4294966528  ;;  %s1448_s26 = sadd.s32 4294967294, %s1081_s24  }
 0x293   : > { %s711_s8 = sand.u32 1, %s1448_s26  }
 0x294   : > { %s712_s13 = scalar_lea.sflag [#allocation7], %s711_s8 }
 0x295   : > { %1064 = dma.done.wait (!%p877_p12), %s712_s13, 320  }
 0x296   : > { %1066 = vsyncadd (!%p877_p12), %s712_s13, 4294966976  ;;  %p23_p11 = scmp.ge.s32.totalorder %s1153_s27, 4   ;;  %s1449_s21 = smov %s1073_s22 }
 0x297   : > { %s1450_s22 = smov %s1077_s23  ;;  %s1451_s23 = smov %s1165_s30 }
 0x298   : > { %s1452_s24 = smov %s1153_s27  ;;  %25 = sbr.rel (!%p23_p11) target bundleno = 10 (0xa), region = 113 }
 0x29f   :  { %726 = vsyncpa [#allocation3], 1 }
 0x2a0   :  { %728 = vsyncpa [#allocation3 + $0x1], 1 }
 0x2a1   :  { %729 = vsyncpa [#allocation4], 1 }
 0x2a2   :  { %731 = vsyncpa [#allocation4 + $0x1], 1 }
 0x2a3   :  { %732 = vsyncpa [#allocation7], 1 }
 0x2a4   :  { %734 = vsyncpa [#allocation7 + $0x1], 1 }

</bundles_post_ra>
